<compile_context>
chip_gen: v7x
topology: tpu7x:2x2x1
jax: 0.10.0
libtpu: 0.0.40
codegen_flags: <defaults>
</compile_context>

<pallas_src>
import functools

import jax
import jax.numpy as jnp
from jax.experimental import pallas as pl
from jax.experimental.pallas import tpu as pltpu


def ffn_kernel(x_ref, w1_ref, b1_ref, w2_ref, b2_ref, o_ref, acc_ref):
    """Grid = (token tiles, dff tiles).  Per step:
         h_k  = relu(x_tile @ W1[:, k] + b1[k])        (f32)
         acc += h_k @ W2[k, :]                          (f32 accumulator)
       and on the last k step: out = acc + b2.
    """
    k = pl.program_id(1)

    @pl.when(k == 0)
    def _():
        acc_ref[...] = jnp.zeros_like(acc_ref)

    # First linear slice: MXU in the operand dtype, f32 accumulation.
    h = jnp.dot(x_ref[...], w1_ref[...], preferred_element_type=jnp.float32)
    h = jnp.maximum(h + b1_ref[...], 0.0)  # bias + ReLU on the f32 accumulator
    # TODO(synk): nn.Dropout is identity in eval mode; training-mode stochastic
    # masking (pltpu.prng_seed / prng_random_bits) intentionally not applied.

    # Second linear slice accumulates into the resident f32 output scratch.
    acc_ref[...] += jnp.dot(
        h.astype(w2_ref.dtype), w2_ref[...], preferred_element_type=jnp.float32
    )

    @pl.when(k == pl.num_programs(1) - 1)
    def _():
        o_ref[...] = (acc_ref[...] + b2_ref[...]).astype(o_ref.dtype)


def _round_up(x, m):
    return (x + m - 1) // m * m


@functools.partial(jax.jit, static_argnames=("tm", "tk"))
def feed_forward(x, w1, b1, w2, b2, *, tm=256, tk=512):
    """x: [batch, seq, d_model] -> [batch, seq, d_model].

    tm: token row tile (MXU-height multiple; 256 is the v6e/v7x sweet spot,
        128-aligned also matches v5e).  tk: dff reduction tile.
    Small shapes are handled by clamping the tiles and zero-padding.
    """
    batch, seq, d_model = x.shape
    d_in, dff = w1.shape
    assert d_in == d_model and w2.shape == (dff, d_model)
    assert b1.shape == (dff,) and b2.shape == (d_model,)

    tokens = batch * seq

    # Effective tiles (clamped for tiny inputs) and padded extents.
    tm_eff = min(tm, _round_up(tokens, 8))
    tk_eff = min(tk, _round_up(dff, 128))
    tokens_p = _round_up(tokens, tm_eff)
    dff_p = _round_up(dff, tk_eff)
    dmodel_p = _round_up(d_model, 128)  # lane-dense stores / (8,128) rule

    # Zero padding keeps the math exact: padded dff columns give relu(0)=0 and
    # contribute nothing; padded d_model / token rows are sliced away.
    x2d = jnp.pad(
        x.reshape(tokens, d_model),
        ((0, tokens_p - tokens), (0, dmodel_p - d_model)),
    )
    w1_p = jnp.pad(w1, ((0, dmodel_p - d_model), (0, dff_p - dff)))
    b1_p = jnp.pad(b1, (0, dff_p - dff)).reshape(1, dff_p)
    w2_p = jnp.pad(w2, ((0, dff_p - dff), (0, dmodel_p - d_model)))
    b2_p = jnp.pad(b2, (0, dmodel_p - d_model)).reshape(1, dmodel_p)

    grid = (tokens_p // tm_eff, dff_p // tk_eff)

    # VMEM budget: double-buffered streaming tiles + f32 accumulator scratch.
    xb, wb = x.dtype.itemsize, w1.dtype.itemsize
    vmem_est = 2 * (
        tm_eff * dmodel_p * xb          # x tile
        + dmodel_p * tk_eff * wb        # W1 slice
        + tk_eff * b1.dtype.itemsize    # b1 slice
        + tk_eff * dmodel_p * wb        # W2 slice
        + dmodel_p * b2.dtype.itemsize  # b2
        + tm_eff * dmodel_p * xb        # out tile
    ) + tm_eff * dmodel_p * 4           # acc scratch
    # >= default scoped 32 MiB, capped so it stays legal on v7x's 64 MiB VMEM.
    vmem_limit = int(min(max(2 * vmem_est, 32 * 1024 * 1024), 64 * 1024 * 1024))

    cost = pl.CostEstimate(
        flops=int(4 * tokens_p * dmodel_p * dff_p),  # two matmuls
        transcendentals=0,
        bytes_accessed=int(
            x2d.size * xb
            + w1_p.size * wb
            + w2_p.size * wb
            + b1_p.size * b1.dtype.itemsize
            + b2_p.size * b2.dtype.itemsize
            + tokens_p * dmodel_p * xb
        ),
    )

    out2d = pl.pallas_call(
        ffn_kernel,
        out_shape=jax.ShapeDtypeStruct((tokens_p, dmodel_p), x.dtype),
        grid_spec=pltpu.PrefetchScalarGridSpec(
            num_scalar_prefetch=0,
            grid=grid,
            in_specs=[
                pl.BlockSpec((tm_eff, dmodel_p), lambda i, k: (i, 0)),  # x tile
                pl.BlockSpec((dmodel_p, tk_eff), lambda i, k: (0, k)),  # W1 slice
                pl.BlockSpec((1, tk_eff), lambda i, k: (0, k)),         # b1 slice
                pl.BlockSpec((tk_eff, dmodel_p), lambda i, k: (k, 0)),  # W2 slice
                pl.BlockSpec((1, dmodel_p), lambda i, k: (0, 0)),       # b2
            ],
            out_specs=pl.BlockSpec((tm_eff, dmodel_p), lambda i, k: (i, 0)),
            scratch_shapes=[pltpu.VMEM((tm_eff, dmodel_p), jnp.float32)],
        ),
        compiler_params=pltpu.CompilerParams(
            dimension_semantics=("parallel", "arbitrary"),
            vmem_limit_bytes=vmem_limit,
        ),
        cost_estimate=cost,
    )(x2d, w1_p, b1_p, w2_p, b2_p)

    return out2d[:tokens, :d_model].reshape(batch, seq, d_model)


def init_params(key, d_model, dff, dtype=jnp.float32):
    """PyTorch-style uniform init U(-1/sqrt(fan_in), +1/sqrt(fan_in))."""
    k1, k2, k3, k4 = jax.random.split(key, 4)
    bound1 = 1.0 / (d_model ** 0.5)
    bound2 = 1.0 / (dff ** 0.5)
    w1 = jax.random.uniform(k1, (d_model, dff), dtype, -bound1, bound1)
    b1 = jax.random.uniform(k2, (dff,), dtype, -bound1, bound1)
    w2 = jax.random.uniform(k3, (dff, d_model), dtype, -bound2, bound2)
    b2 = jax.random.uniform(k4, (d_model,), dtype, -bound2, bound2)
    return w1, b1, w2, b2


if __name__ == "__main__":
    key = jax.random.PRNGKey(0)
    kx, kp = jax.random.split(key)

    batch, seq, d_model, dff = 2, 8, 64, 256
    x = jax.random.normal(kx, (batch, seq, d_model), dtype=jnp.float32)
    w1, b1, w2, b2 = init_params(kp, d_model, dff)

    ref = jnp.maximum(x @ w1 + b1, 0.0) @ w2 + b2  # eval-mode dropout == identity

    # 1) Default (tuned) tiles -- single grid step at these toy shapes.
    out = jax.block_until_ready(feed_forward(x, w1, b1, w2, b2))
    assert out.shape == x.shape
    assert jnp.allclose(out, ref, atol=1e-4, rtol=1e-4)

    # 2) Small explicit tiles to exercise the multi-step token + dff grid.
    out_tiled = jax.block_until_ready(feed_forward(x, w1, b1, w2, b2, tm=8, tk=128))
    assert jnp.allclose(out_tiled, ref, atol=1e-4, rtol=1e-4)

    # 3) bf16 operands (full-rate MXU path, f32 accumulation) -- loose tolerance.
    bf = jnp.bfloat16
    out_bf16 = jax.block_until_ready(
        feed_forward(x.astype(bf), w1.astype(bf), b1.astype(bf),
                     w2.astype(bf), b2.astype(bf))
    )
    assert jnp.allclose(out_bf16.astype(jnp.float32), ref, atol=0.1, rtol=0.1)

    print("KERNEL_OK")
</pallas_src>

<mosaic_0001>
module attributes {stable_mosaic.version = 11 : i64} {
  func.func @ffn_kernel(%arg0: i32, %arg1: i32, %arg2: memref<16x128xf32, #tpu.memory_space<vmem>>, %arg3: memref<128x256xf32, #tpu.memory_space<vmem>>, %arg4: memref<1x256xf32, #tpu.memory_space<vmem>>, %arg5: memref<256x128xf32, #tpu.memory_space<vmem>>, %arg6: memref<1x128xf32, #tpu.memory_space<vmem>>, %arg7: memref<16x128xf32, #tpu.memory_space<vmem>>, %arg8: memref<16x128xf32, #tpu.memory_space<vmem>>) attributes {dimension_semantics = [#tpu.dimension_semantics<parallel>, #tpu.dimension_semantics<arbitrary>], iteration_bounds = array<i64: 1, 1>, scalar_prefetch = 0 : i64, scratch_operands = 1 : i64, tpu.core_type = #tpu.core_type<tc>, window_params = [{transform_indices = @transform_0, window_bounds = array<i64: 16, 128>}, {transform_indices = @transform_1, window_bounds = array<i64: 128, 256>}, {transform_indices = @transform_2, window_bounds = array<i64: 1, 256>}, {transform_indices = @transform_3, window_bounds = array<i64: 256, 128>}, {pipeline_mode = #tpu.pipeline_mode<synchronous>, transform_indices = @transform_4, window_bounds = array<i64: 1, 128>}, {transform_indices = @transform_5, window_bounds = array<i64: 16, 128>}]} {
    %c0_i32 = arith.constant 0 : i32
    %0 = arith.cmpi eq, %arg1, %c0_i32 : i32
    %1 = arith.extui %0 : i1 to i32
    %c0_i32_0 = arith.constant 0 : i32
    %2 = arith.cmpi ne, %1, %c0_i32_0 : i32
    scf.if %2 {
      %cst_16 = arith.constant 0.000000e+00 : f32
      %19 = vector.broadcast %cst_16 : f32 to vector<16x128xf32>
      %c0_17 = arith.constant 0 : index
      %c0_18 = arith.constant 0 : index
      %20 = vector.load %arg8[%c0_17, %c0_18] : memref<16x128xf32, #tpu.memory_space<vmem>>, vector<16x128xf32>
      tpu.vector_store %arg8[%c0_17, %c0_18], %19 {strides = array<i32>} : memref<16x128xf32, #tpu.memory_space<vmem>>, vector<16x128xf32>,
    } else {
    }
    %c0 = arith.constant 0 : index
    %c0_1 = arith.constant 0 : index
    %3 = vector.load %arg2[%c0, %c0_1] : memref<16x128xf32, #tpu.memory_space<vmem>>, vector<16x128xf32>
    %c0_2 = arith.constant 0 : index
    %c0_3 = arith.constant 0 : index
    %4 = vector.load %arg3[%c0_2, %c0_3] : memref<128x256xf32, #tpu.memory_space<vmem>>, vector<128x256xf32>
    %cst = arith.constant dense<0.000000e+00> : vector<16x256xf32>
    %5 = tpu.matmul %3, %4, %cst {dimension_numbers = #tpu.dot_dimension_numbers<[1], [0], [0], [1], [0, 0, 1, 1], [], []>} : vector<16x128xf32>, vector<128x256xf32>, vector<16x256xf32> -> vector<16x256xf32>
    %c0_4 = arith.constant 0 : index
    %c0_5 = arith.constant 0 : index
    %6 = vector.load %arg4[%c0_4, %c0_5] : memref<1x256xf32, #tpu.memory_space<vmem>>, vector<1x256xf32>
    %7 = vector.broadcast %6 : vector<1x256xf32> to vector<16x256xf32>
    %8 = arith.addf %5, %7 : vector<16x256xf32>
    %cst_6 = arith.constant 0.000000e+00 : f32
    %9 = vector.broadcast %cst_6 : f32 to vector<16x256xf32>
    %10 = arith.maximumf %8, %9 : vector<16x256xf32>
    %c0_7 = arith.constant 0 : index
    %c0_8 = arith.constant 0 : index
    %11 = vector.load %arg8[%c0_7, %c0_8] : memref<16x128xf32, #tpu.memory_space<vmem>>, vector<16x128xf32>
    %c0_9 = arith.constant 0 : index
    %c0_10 = arith.constant 0 : index
    %12 = vector.load %arg5[%c0_9, %c0_10] : memref<256x128xf32, #tpu.memory_space<vmem>>, vector<256x128xf32>
    %cst_11 = arith.constant dense<0.000000e+00> : vector<16x128xf32>
    %13 = tpu.matmul %10, %12, %cst_11 {dimension_numbers = #tpu.dot_dimension_numbers<[1], [0], [0], [1], [0, 0, 1, 1], [], []>} : vector<16x256xf32>, vector<256x128xf32>, vector<16x128xf32> -> vector<16x128xf32>
    %14 = arith.addf %11, %13 : vector<16x128xf32>
    %c0_12 = arith.constant 0 : index
    %c0_13 = arith.constant 0 : index
    %15 = vector.load %arg8[%c0_12, %c0_13] : memref<16x128xf32, #tpu.memory_space<vmem>>, vector<16x128xf32>
    tpu.vector_store %arg8[%c0_12, %c0_13], %14 {strides = array<i32>} : memref<16x128xf32, #tpu.memory_space<vmem>>, vector<16x128xf32>,
    %c0_i32_14 = arith.constant 0 : i32
    %16 = arith.cmpi eq, %arg1, %c0_i32_14 : i32
    %17 = arith.extui %16 : i1 to i32
    %c0_i32_15 = arith.constant 0 : i32
    %18 = arith.cmpi ne, %17, %c0_i32_15 : i32
    scf.if %18 {
      %c0_16 = arith.constant 0 : index
      %c0_17 = arith.constant 0 : index
      %19 = vector.load %arg8[%c0_16, %c0_17] : memref<16x128xf32, #tpu.memory_space<vmem>>, vector<16x128xf32>
      %c0_18 = arith.constant 0 : index
      %c0_19 = arith.constant 0 : index
      %20 = vector.load %arg6[%c0_18, %c0_19] : memref<1x128xf32, #tpu.memory_space<vmem>>, vector<1x128xf32>
      %21 = vector.broadcast %20 : vector<1x128xf32> to vector<16x128xf32>
      %22 = arith.addf %19, %21 : vector<16x128xf32>
      %c0_20 = arith.constant 0 : index
      %c0_21 = arith.constant 0 : index
      %23 = vector.load %arg7[%c0_20, %c0_21] : memref<16x128xf32, #tpu.memory_space<vmem>>, vector<16x128xf32>
      tpu.vector_store %arg7[%c0_20, %c0_21], %22 {strides = array<i32>} : memref<16x128xf32, #tpu.memory_space<vmem>>, vector<16x128xf32>,
    } else {
    }
    return
  }
  func.func @transform_0(%arg0: i32, %arg1: i32) -> (i32, i32) {
    %c0_i32 = arith.constant 0 : i32
    %c0_i32_0 = arith.constant 0 : i32
    return %arg0, %c0_i32 : i32, i32
  }
  func.func @transform_1(%arg0: i32, %arg1: i32) -> (i32, i32) {
    %c0_i32 = arith.constant 0 : i32
    %c0_i32_0 = arith.constant 0 : i32
    return %c0_i32, %arg1 : i32, i32
  }
  func.func @transform_2(%arg0: i32, %arg1: i32) -> (i32, i32) {
    %c0_i32 = arith.constant 0 : i32
    %c0_i32_0 = arith.constant 0 : i32
    return %c0_i32, %arg1 : i32, i32
  }
  func.func @transform_3(%arg0: i32, %arg1: i32) -> (i32, i32) {
    %c0_i32 = arith.constant 0 : i32
    %c0_i32_0 = arith.constant 0 : i32
    return %arg1, %c0_i32 : i32, i32
  }
  func.func @transform_4(%arg0: i32, %arg1: i32) -> (i32, i32) {
    %c0_i32 = arith.constant 0 : i32
    %c0_i32_0 = arith.constant 0 : i32
    %c0_i32_1 = arith.constant 0 : i32
    return %c0_i32, %c0_i32_0 : i32, i32
  }
  func.func @transform_5(%arg0: i32, %arg1: i32) -> (i32, i32) {
    %c0_i32 = arith.constant 0 : i32
    %c0_i32_0 = arith.constant 0 : i32
    return %arg0, %c0_i32 : i32, i32
  }
}

</mosaic_0001>

<bundles_post_ra>
// kernel: feed_forward.1
= control target key start
LH: loop header
LB: loop body
LE: loop exit
PB: predicated region body
PF: predicated region fallthrough
CT: control target
= control target key end

     0   :  { %v390_v3 = vmov 0.0   ;;  %s633_s1 = inlined_call_operand.vmem [shape: f32[128,256], index: 1, kind: input, shape index: {}]   ;;  %s634_s3 = inlined_call_operand.vmem [shape: f32[256,128], index: 3, kind: input, shape index: {}]   ;;  %s635_s0 = inlined_call_operand.vmem [shape: f32[16,128], index: 0, kind: input, shape index: {}]   ;;  %s636_s2 = inlined_call_operand.vmem [shape: f32[1,256], index: 2, kind: input, shape index: {}]   ;;  %s637_s4 = inlined_call_operand.vmem [shape: f32[1,128], index: 4, kind: input, shape index: {}]   ;;  %s638_s5 = inlined_call_operand.vmem [shape: f32[16,128], index: 5, kind: output, shape index: {}]  }
   0x1   :  { %v29_v0 = vld [vmem:[%s633_s1 + $0x8] sm:$0xff]  ;;  %v31_v1 = vld [vmem:[%s633_s1 + $0x18] sm:$0xff]  ;;  %v28_v2 = vld [vmem:[%s633_s1] sm:$0xff]  ;;  %136 = vmatprep.mubr.f32.mxu0 %v390_v3 }
   0x2   :  { %v325_v4 = vpack.c.bf16 %v31_v1, %v29_v0  ;;  %v30_v5 = vld [vmem:[%s633_s1 + $0x10] sm:$0xff]  ;;  %v33_v6 = vld [vmem:[%s633_s1 + $0x28] sm:$0xff]  ;;  %v35_v7 = vld [vmem:[%s633_s1 + $0x38] sm:$0xff] }
   0x3   :  { %v327_v8 = vpack.c.bf16 %v30_v5, %v28_v2  ;;  %v329_v9 = vpack.c.bf16 %v35_v7, %v33_v6  ;;  %v32_v10 = vld [vmem:[%s633_s1 + $0x20] sm:$0xff]  ;;  %v34_v11 = vld [vmem:[%s633_s1 + $0x30] sm:$0xff]  ;;  %v37_v12 = vld [vmem:[%s633_s1 + $0x48] sm:$0xff] }
   0x4   :  { %326 = vmatprep.subr.bf16.mxu0 %v325_v4  ;;  %v39_v13 = vld [vmem:[%s633_s1 + $0x58] sm:$0xff]  ;;  %v331_v14 = vpack.c.bf16 %v34_v11, %v32_v10  ;;  %v36_v16 = vld [vmem:[%s633_s1 + $0x40] sm:$0xff]  ;;  %v38_v17 = vld [vmem:[%s633_s1 + $0x50] sm:$0xff] }
   0x5   :  { %328 = vmatpush1.bf16.msra.mxu0 %v327_v8  ;;  %v333_v15 = vpack.c.bf16 %v39_v13, %v37_v12  ;;  %v41_v18 = vld [vmem:[%s633_s1 + $0x68] sm:$0xff]  ;;  %v43_v19 = vld [vmem:[%s633_s1 + $0x78] sm:$0xff]  ;;  %v335_v20 = vpack.c.bf16 %v38_v17, %v36_v16  ;;  %v40_v22 = vld [vmem:[%s633_s1 + $0x60] sm:$0xff] }
   0x6   :  { %330 = vmatprep.subr.bf16.mxu0 %v329_v9  ;;  %v337_v21 = vpack.c.bf16 %v43_v19, %v41_v18  ;;  %v42_v23 = vld [vmem:[%s633_s1 + $0x70] sm:$0xff]  ;;  %v45_v24 = vld [vmem:[%s633_s1 + $0x88] sm:$0xff]  ;;  %v47_v25 = vld [vmem:[%s633_s1 + $0x98] sm:$0xff] }
   0x7   :  { %v44_v26 = vld [vmem:[%s633_s1 + $0x80] sm:$0xff]  ;;  %v46_v27 = vld [vmem:[%s633_s1 + $0x90] sm:$0xff]  ;;  %v172_v29 = vld [vmem:[%s634_s3 + $0x88] sm:$0xff]  ;;  %v339_v30 = vpack.c.bf16 %v42_v23, %v40_v22  ;;  %v341_v36 = vpack.c.bf16 %v47_v25, %v45_v24 }
   0x8   :  { %v171_v28 = vld [vmem:[%s634_s3 + $0x80] sm:$0xff]  ;;  %v49_v31 = vld [vmem:[%s633_s1 + $0xa8] sm:$0xff]  ;;  %v173_v35 = vld [vmem:[%s634_s3 + $0x90] sm:$0xff]  ;;  %v343_v46 = vpack.c.bf16 %v46_v27, %v44_v26 }
   0x9   :  { %332 = vmatpush1.bf16.msra.mxu0 %v331_v14  ;;  %v357_v32 = vpack.c.bf16 %v172_v29, %v171_v28  ;;  %v155_v33 = vld [vmem:[%s634_s3] sm:$0xff]  ;;  %v156_v34 = vld [vmem:[%s634_s3 + $0x8] sm:$0xff]  ;;  %v174_v38 = vld [vmem:[%s634_s3 + $0x98] sm:$0xff] }
   0xa   :  { %334 = vmatprep.subr.bf16.mxu0 %v333_v15  ;;  %v359_v37 = vpack.c.bf16 %v156_v34, %v155_v33  ;;  %v157_v39 = vld [vmem:[%s634_s3 + $0x10] sm:$0xff]  ;;  %v158_v40 = vld [vmem:[%s634_s3 + $0x18] sm:$0xff]  ;;  %v361_v42 = vpack.c.bf16 %v174_v38, %v173_v35  ;;  %v175_v43 = vld [vmem:[%s634_s3 + $0xa0] sm:$0xff]  ;;  %v62_v35 = vlaneseq }
   0xb   :  { %v51_v41 = vld [vmem:[%s633_s1 + $0xb8] sm:$0xff]  ;;  %358 = vmatprep.subr.bf16.mxu1 %v357_v32  ;;  %v176_v44 = vld [vmem:[%s634_s3 + $0xa8] sm:$0xff]  ;;  %v363_v45 = vpack.c.bf16 %v158_v40, %v157_v39  ;;  %v48_v47 = vld [vmem:[%s633_s1 + $0xa0] sm:$0xff] }
   0xc   :  { %360 = vmatpush3.bf16.msra.mxu1 %v359_v37  ;;  %v365_v48 = vpack.c.bf16 %v176_v44, %v175_v43  ;;  %v159_v49 = vld [vmem:[%s634_s3 + $0x20] sm:$0xff]  ;;  %v160_v50 = vld [vmem:[%s634_s3 + $0x28] sm:$0xff]  ;;  %v345_v51 = vpack.c.bf16 %v51_v41, %v49_v31  ;;  %v50_v52 = vld [vmem:[%s633_s1 + $0xb0] sm:$0xff] }
   0xd   :  { %336 = vmatpush1.bf16.msra.mxu0 %v335_v20  ;;  %362 = vmatprep.subr.bf16.mxu1 %v361_v42  ;;  %v177_v53 = vld [vmem:[%s634_s3 + $0xb0] sm:$0xff]  ;;  %v178_v54 = vld [vmem:[%s634_s3 + $0xb8] sm:$0xff]  ;;  %v53_v55 = vld [vmem:[%s633_s1 + $0xc8] sm:$0xff]  ;;  %v367_v57 = vpack.c.bf16 %v160_v50, %v159_v49  ;;  %v347_v58 = vpack.c.bf16 %v50_v52, %v48_v47 }
   0xe   :  { %338 = vmatprep.subr.bf16.mxu0 %v337_v21  ;;  %v55_v56 = vld [vmem:[%s633_s1 + $0xd8] sm:$0xff]  ;;  %v52_v59 = vld [vmem:[%s633_s1 + $0xc0] sm:$0xff]  ;;  %v369_v60 = vpack.c.bf16 %v178_v54, %v177_v53  ;;  %v161_v61 = vld [vmem:[%s634_s3 + $0x30] sm:$0xff] }
   0xf   :  { %v162_v62 = vld [vmem:[%s634_s3 + $0x38] sm:$0xff]  ;;  %v349_v63 = vpack.c.bf16 %v55_v56, %v53_v55  ;;  %v54_v0 = vld [vmem:[%s633_s1 + $0xd0] sm:$0xff]  ;;  %v179_v1 = vld [vmem:[%s634_s3 + $0xc0] sm:$0xff] }
  0x10   :  { %364 = vmatpush3.bf16.msra.mxu1 %v363_v45  ;;  %v180_v2 = vld [vmem:[%s634_s3 + $0xc8] sm:$0xff]  ;;  %v59_v5 = vld [vmem:[%s633_s1 + $0xf8] sm:$0xff]  ;;  %v371_v6 = vpack.c.bf16 %v162_v62, %v161_v61  ;;  %v351_v7 = vpack.c.bf16 %v54_v0, %v52_v59  ;;  %v56_v8 = vld [vmem:[%s633_s1 + $0xe0] sm:$0xff] }
  0x11   :  { %340 = vmatpush1.bf16.msra.mxu0 %v339_v30  ;;  %366 = vmatprep.subr.bf16.mxu1 %v365_v48  ;;  %v57_v4 = vld [vmem:[%s633_s1 + $0xe8] sm:$0xff]  ;;  %v373_v9 = vpack.c.bf16 %v180_v2, %v179_v1  ;;  %v163_v10 = vld [vmem:[%s634_s3 + $0x40] sm:$0xff]  ;;  %v58_v13 = vld [vmem:[%s633_s1 + $0xf0] sm:$0xff] }
  0x12   :  { %342 = vmatprep.subr.bf16.mxu0 %v341_v36  ;;  %v164_v11 = vld [vmem:[%s634_s3 + $0x48] sm:$0xff]  ;;  %v353_v12 = vpack.c.bf16 %v59_v5, %v57_v4  ;;  %v181_v14 = vld [vmem:[%s634_s3 + $0xd0] sm:$0xff]  ;;  %v182_v15 = vld [vmem:[%s634_s3 + $0xd8] sm:$0xff]  ;;  %v355_v17 = vpack.c.bf16 %v58_v13, %v56_v8  ;;  %v63_v36 = vshrl.u32 %v62_v35, 7 }
  0x13   :  { %v375_v16 = vpack.c.bf16 %v164_v11, %v163_v10  ;;  %v377_v18 = vpack.c.bf16 %v182_v15, %v181_v14  ;;  %v165_v19 = vld [vmem:[%s634_s3 + $0x50] sm:$0xff]  ;;  %v166_v20 = vld [vmem:[%s634_s3 + $0x58] sm:$0xff]  ;;  %v183_v21 = vld [vmem:[%s634_s3 + $0xe0] sm:$0xff] }
  0x14   :  { %368 = vmatpush3.bf16.msra.mxu1 %v367_v57  ;;  %v184_v22 = vld [vmem:[%s634_s3 + $0xe8] sm:$0xff]  ;;  %v379_v23 = vpack.c.bf16 %v166_v20, %v165_v19  ;;  %v26_v24 = vld [vmem:[%s635_s0] sm:$0xff]  ;;  %v186_v30 = vld [vmem:[%s634_s3 + $0xf8] sm:$0xff]  ;;  %v64_v37 = vsub.s32 0, %v63_v36  ;;  %v68_v39 = vsub.s32 1, %v63_v36 }
  0x15   :  { %344 = vmatpush1.bf16.msra.mxu0 %v343_v46  ;;  %370 = vmatprep.subr.bf16.mxu1 %v369_v60  ;;  %v381_v25 = vpack.c.bf16 %v184_v22, %v183_v21  ;;  %v27_v26 = vld [vmem:[%s635_s0 + $0x8] sm:$0xff]  ;;  %v167_v27 = vld [vmem:[%s634_s3 + $0x60] sm:$0xff]  ;;  %v169_v32 = vld [vmem:[%s634_s3 + $0x70] sm:$0xff] }
  0x16   :  { %346 = vmatprep.subr.bf16.mxu0 %v345_v51  ;;  %v168_v28 = vld [vmem:[%s634_s3 + $0x68] sm:$0xff]  ;;  %v170_v33 = vld [vmem:[%s634_s3 + $0x78] sm:$0xff]  ;;  %v60_v38 = vld [vmem:[%s636_s2] sm:$0x3] }
  0x17   :  { %v383_v29 = vpack.c.bf16 %v168_v28, %v167_v27  ;;  %v387_v34 = vpack.c.bf16 %v170_v33, %v169_v32  ;;  %v65_v40 = vrot.slane %v60_v38, %v64_v37  ;;  %v69_v41 = vrot.slane %v60_v38, %v68_v39  ;;  %v286_v56 = vld [vmem:[%s637_s4] ss:$0 sm:$0xff] }
  0x18   :  { %372 = vmatpush3.bf16.msra.mxu1 %v371_v6 }
  0x19   :  { %348 = vmatpush1.bf16.msra.mxu0 %v347_v58  ;;  %374 = vmatprep.subr.bf16.mxu1 %v373_v9 }
  0x1a   :  { %350 = vmatprep.subr.bf16.mxu0 %v349_v63 }
  0x1c   :  { %376 = vmatpush3.bf16.msra.mxu1 %v375_v16 }
  0x1d   :  { %352 = vmatpush1.bf16.msra.mxu0 %v351_v7  ;;  %378 = vmatprep.subr.bf16.mxu1 %v377_v18 }
  0x1e   :  { %354 = vmatprep.subr.bf16.mxu0 %v353_v12 }
  0x20   :  { %380 = vmatpush3.bf16.msra.mxu1 %v379_v23 }
  0x21   :  { %356 = vmatpush1.bf16.msra.mxu0 %v355_v17  ;;  %382 = vmatprep.subr.bf16.mxu1 %v381_v25 }
  0x24   :  { %137 = vmatmul.mubr.f32.vlgmr.msra.gmra.mrb[0].mxu0 %v26_v24  ;;  %384 = vmatpush3.bf16.msra.mxu1 %v383_v29 }
  0x25   :  { %142 = vmatprep.mubr.f32.mxu0 %v390_v3  ;;  %v185_v3 = vld [vmem:[%s634_s3 + $0xf0] sm:$0xff] }
  0x26   :  { %v385_v31 = vpack.c.bf16 %v186_v30, %v185_v3 }
  0x28   :  { %143 = vmatmul.mubr.f32.gmra.mrb[2].mxu0 %v27_v26  ;;  %386 = vmatprep.subr.bf16.mxu1 %v385_v31 }
  0x29   :  { %388 = vmatpush3.bf16.msra.mxu1 %v387_v34 }
  0xf7   :  { %v138_v42 = vpop.f32.mrb[0].mxu0 }
  0xf8   :  { %v139_v43 = vadd.f32 %v138_v42, %v65_v40  ;;  %v140_v44 = vpop.f32.mrb[1].mxu0 }
  0xf9   :  { %v141_v45 = vadd.f32 %v140_v44, %v69_v41 }
  0xfa   :  { %v149_v48 = vmax.f32 %v139_v43, 0.0 }
  0xfb   :  { %v144_v46 = vpop.f32.mrb[2].mxu0  ;;  %v150_v47 = vmax.f32 %v141_v45, 0.0 }
  0xfc   :  { %v145_v49 = vadd.f32 %v144_v46, %v65_v40  ;;  %v146_v50 = vpop.f32.mrb[3].mxu0 }
  0xfd   :  { %v147_v51 = vadd.f32 %v146_v50, %v69_v41  ;;  %251 = vmatprep.mubr.f32.mxu1 %v150_v47 }
  0xfe   :  { %252 = vmatmul.mubr.f32.vlgmr.msra.gmra.mrb[0].mxu1 %v149_v48  ;;  %v151_v53 = vmax.f32 %v145_v49, 0.0 }
  0xff   :  { %v152_v52 = vmax.f32 %v147_v51, 0.0 }
 0x101   :  { %256 = vmatprep.mubr.f32.mxu1 %v152_v52 }
 0x102   :  { %257 = vmatmul.mubr.f32.gmra.mrb[2].mxu1 %v151_v53 }
 0x1d1   :  { %v319_v54 = vpop.f32.mrb[0].mxu1 }
 0x1d2   :  { %v320_v55 = vpop.f32.mrb[1].mxu1 }
 0x1d3   :  { %v321_v57 = vadd.f32 %v320_v55, %v319_v54 }
 0x1d5   :  { %v278_v58 = vadd.f32 %v321_v57, %v286_v56  ;;  %v322_v59 = vpop.f32.mrb[2].mxu1 }
 0x1d6   :  { %v323_v60 = vpop.f32.mrb[3].mxu1 }
 0x1d7   :  { %280 = vst [vmem:[%s638_s5] sm:$0xff] %v278_v58  ;;  %v324_v61 = vadd.f32 %v323_v60, %v322_v59 }
 0x1d9   :  { %v279_v62 = vadd.f32 %v324_v61, %v286_v56 }
 0x1db   :  { %281 = vst [vmem:[%s638_s5 + $0x8] sm:$0xff] %v279_v62 }

</bundles_post_ra>
